<compile_context>
chip_gen: v7x
topology: tpu7x:2x2x1
jax: 0.10.0
libtpu: 0.0.40
codegen_flags: <defaults>
</compile_context>

<pallas_src>
import math

import jax
import jax.numpy as jnp
from jax import lax
from jax.experimental import pallas as pl
from jax.experimental.pallas import tpu as pltpu

INPUT_DIM = 15
PADDED_INPUT_DIM = 128          # lane-dense input stream (15 -> 128, zero padded)
HIDDEN_DIMS = (256, 128, 64)
OUTPUT_DIM = 2
LN_EPS = 1e-5                   # torch.nn.LayerNorm default


def _round_up(n, m):
    return ((n + m - 1) // m) * m


def _risk_mlp_kernel(x_ref,
                     w1_ref, b1_ref, g1_ref, be1_ref,
                     w2_ref, b2_ref, g2_ref, be2_ref,
                     w3_ref, b3_ref, g3_ref, be3_ref,
                     w4_ref, b4_ref,
                     o_ref):
    def block(h_bf16, w_ref, b_ref, g_ref, be_ref):
        # Linear (bf16 MXU inputs, f32 accumulation) -> ReLU -> LayerNorm (f32).
        z = jnp.dot(h_bf16, w_ref[...], preferred_element_type=jnp.float32)
        z = z + b_ref[...]
        z = jnp.maximum(z, 0.0)
        # single-pass LN statistics: var = E[z^2] - E[z]^2
        s1 = jnp.mean(z, axis=-1, keepdims=True)
        s2 = jnp.mean(z * z, axis=-1, keepdims=True)
        var = s2 - s1 * s1
        zn = (z - s1) * lax.rsqrt(var + LN_EPS)
        out = zn * g_ref[...] + be_ref[...]
        # Dropout is identity in eval mode.
        return out.astype(jnp.bfloat16)   # bf16 input for the next matmul

    h = x_ref[...]                                        # [TILE_B, 128] bf16
    h = block(h, w1_ref, b1_ref, g1_ref, be1_ref)         # -> 256
    h = block(h, w2_ref, b2_ref, g2_ref, be2_ref)         # -> 128
    h = block(h, w3_ref, b3_ref, g3_ref, be3_ref)         # -> 64

    z = jnp.dot(h, w4_ref[...], preferred_element_type=jnp.float32) + b4_ref[...]
    out = jax.nn.sigmoid(z)                               # f32 [TILE_B, 2]

    # stop_loss_mult   = 0.5 + 2.5 * out[:, 0]
    # take_profit_mult = 1.0 + 4.0 * out[:, 1]
    # tiny (1, 2) scale/shift rows (no full-tile iota / selects)
    col = lax.broadcasted_iota(jnp.int32, (1, OUTPUT_DIM), 1)
    scale = jnp.where(col == 0, 2.5, 4.0)
    shift = jnp.where(col == 0, 0.5, 1.0)
    o_ref[...] = out * scale + shift


def _xavier_uniform(key, fan_in, fan_out, dtype=jnp.float32):
    bound = math.sqrt(6.0 / (fan_in + fan_out))
    return jax.random.uniform(key, (fan_in, fan_out), dtype=dtype,
                              minval=-bound, maxval=bound)


def init_params(key):
    """Parameter init matching the PyTorch module's _initialize_weights."""
    dims = (INPUT_DIM,) + HIDDEN_DIMS + (OUTPUT_DIM,)
    keys = jax.random.split(key, len(dims) - 1)
    params = []
    for i, (din, dout) in enumerate(zip(dims[:-1], dims[1:])):
        w = _xavier_uniform(keys[i], din, dout)          # [in, out]
        b = jnp.full((1, dout), 0.01, jnp.float32)       # bias = 0.01
        params.append((w, b))
    ln = [(jnp.ones((1, d), jnp.float32), jnp.zeros((1, d), jnp.float32))
          for d in HIDDEN_DIMS]
    return params, ln


def risk_management_forward(x, params, ln, *, tile_b=1024):
    """x: [batch, 15] float32 -> [batch, 2] float32 ([stop_loss_mult, take_profit_mult])."""
    (w1, b1), (w2, b2), (w3, b3), (w4, b4) = params
    (g1, be1), (g2, be2), (g3, be3) = ln

    batch = x.shape[0]
    tile_b = max(8, min(tile_b, _round_up(batch, 8)))
    padded_batch = _round_up(batch, tile_b)
    grid = (padded_batch // tile_b,)

    # Lane-dense bf16 input stream: pad feature dim 15 -> 128, batch -> tile multiple.
    xp = jnp.zeros((padded_batch, PADDED_INPUT_DIM), jnp.bfloat16)
    xp = xp.at[:batch, :INPUT_DIM].set(x.astype(jnp.bfloat16))

    # bf16 weights (MXU inputs); W1 padded with zero rows to match padded x.
    w1p = jnp.zeros((PADDED_INPUT_DIM, HIDDEN_DIMS[0]), jnp.bfloat16)
    w1p = w1p.at[:INPUT_DIM].set(w1.astype(jnp.bfloat16))
    w2b = w2.astype(jnp.bfloat16)
    w3b = w3.astype(jnp.bfloat16)
    w4b = w4.astype(jnp.bfloat16)

    # Biases / LN params stay f32 (elementwise math in f32).
    weight_args = (w1p, b1, g1, be1,
                   w2b, b2, g2, be2,
                   w3b, b3, g3, be3,
                   w4b, b4)

    x_spec = pl.BlockSpec((tile_b, PADDED_INPUT_DIM), lambda i: (i, 0))
    out_spec = pl.BlockSpec((tile_b, OUTPUT_DIM), lambda i: (i, 0))
    # Same block every grid step -> weights stay VMEM-resident (no re-DMA).
    resident_specs = [pl.BlockSpec(a.shape, lambda i: (0, 0)) for a in weight_args]

    out = pl.pallas_call(
        _risk_mlp_kernel,
        out_shape=jax.ShapeDtypeStruct((padded_batch, OUTPUT_DIM), jnp.float32),
        grid=grid,
        in_specs=[x_spec] + resident_specs,
        out_specs=out_spec,
        compiler_params=pltpu.CompilerParams(
            dimension_semantics=("parallel",),
            vmem_limit_bytes=32 << 20),
    )(xp, *weight_args)
    return out[:batch]


def _reference_forward_matched(x, params, ln):
    """Pure-JAX reference matching the kernel's precision (bf16 matmul inputs, f32 math)."""
    (w1, b1), (w2, b2), (w3, b3), (w4, b4) = params
    (g1, be1), (g2, be2), (g3, be3) = ln
    h = x
    for (w, b), (g, be) in zip(((w1, b1), (w2, b2), (w3, b3)),
                               ((g1, be1), (g2, be2), (g3, be3))):
        z = jnp.dot(h.astype(jnp.bfloat16), w.astype(jnp.bfloat16),
                    preferred_element_type=jnp.float32) + b
        z = jnp.maximum(z, 0.0)
        s1 = jnp.mean(z, axis=-1, keepdims=True)
        s2 = jnp.mean(z * z, axis=-1, keepdims=True)
        h = (z - s1) * lax.rsqrt(s2 - s1 * s1 + LN_EPS) * g + be
    z = jnp.dot(h.astype(jnp.bfloat16), w4.astype(jnp.bfloat16),
                preferred_element_type=jnp.float32) + b4
    o = jax.nn.sigmoid(z)
    return jnp.stack([0.5 + 2.5 * o[:, 0], 1.0 + 4.0 * o[:, 1]], axis=1)


def _reference_forward_f32(x, params, ln):
    """Full-f32 reference (two-pass LN) for a looser structural sanity check."""
    (w1, b1), (w2, b2), (w3, b3), (w4, b4) = params
    (g1, be1), (g2, be2), (g3, be3) = ln
    h = x
    for (w, b), (g, be) in zip(((w1, b1), (w2, b2), (w3, b3)),
                               ((g1, be1), (g2, be2), (g3, be3))):
        z = jnp.maximum(h @ w + b, 0.0)
        m = jnp.mean(z, axis=-1, keepdims=True)
        v = jnp.mean((z - m) ** 2, axis=-1, keepdims=True)
        h = (z - m) / jnp.sqrt(v + LN_EPS) * g + be
    o = jax.nn.sigmoid(h @ w4 + b4)
    return jnp.stack([0.5 + 2.5 * o[:, 0], 1.0 + 4.0 * o[:, 1]], axis=1)


if __name__ == "__main__":
    key = jax.random.PRNGKey(0)
    k_param, k_x1, k_x2 = jax.random.split(key, 3)

    params, ln = init_params(k_param)

    # Small case: single grid step.
    batch = 8
    x = jax.random.normal(k_x1, (batch, INPUT_DIM), dtype=jnp.float32)
    out = jax.block_until_ready(risk_management_forward(x, params, ln))
    assert out.shape == (batch, OUTPUT_DIM)
    ref_m = _reference_forward_matched(x, params, ln)
    ref_f = _reference_forward_f32(x, params, ln)
    assert jnp.allclose(out, ref_m, atol=1e-3, rtol=1e-3), (out, ref_m)
    assert jnp.allclose(out, ref_f, atol=0.15), (out, ref_f)

    # Larger case: exercises batch tiling + padding (grid of 4 steps).
    batch2 = 200
    x2 = jax.random.normal(k_x2, (batch2, INPUT_DIM), dtype=jnp.float32)
    out2 = jax.block_until_ready(risk_management_forward(x2, params, ln, tile_b=64))
    assert out2.shape == (batch2, OUTPUT_DIM)
    ref2 = _reference_forward_matched(x2, params, ln)
    assert jnp.allclose(out2, ref2, atol=1e-3, rtol=1e-3), (out2, ref2)

    print("KERNEL_OK")
</pallas_src>

<mosaic_0001>
module attributes {stable_mosaic.version = 11 : i64} {
  func.func @_risk_mlp_kernel(%arg0: i32, %arg1: memref<8x128xbf16, #tpu.memory_space<vmem>>, %arg2: memref<128x256xbf16, #tpu.memory_space<vmem>>, %arg3: memref<1x256xf32, #tpu.memory_space<vmem>>, %arg4: memref<1x256xf32, #tpu.memory_space<vmem>>, %arg5: memref<1x256xf32, #tpu.memory_space<vmem>>, %arg6: memref<256x128xbf16, #tpu.memory_space<vmem>>, %arg7: memref<1x128xf32, #tpu.memory_space<vmem>>, %arg8: memref<1x128xf32, #tpu.memory_space<vmem>>, %arg9: memref<1x128xf32, #tpu.memory_space<vmem>>, %arg10: memref<128x64xbf16, #tpu.memory_space<vmem>>, %arg11: memref<1x64xf32, #tpu.memory_space<vmem>>, %arg12: memref<1x64xf32, #tpu.memory_space<vmem>>, %arg13: memref<1x64xf32, #tpu.memory_space<vmem>>, %arg14: memref<64x2xbf16, #tpu.memory_space<vmem>>, %arg15: memref<1x2xf32, #tpu.memory_space<vmem>>, %arg16: memref<8x2xf32, #tpu.memory_space<vmem>>) attributes {dimension_semantics = [#tpu.dimension_semantics<parallel>], iteration_bounds = array<i64: 1>, scalar_prefetch = 0 : i64, scratch_operands = 0 : i64, tpu.core_type = #tpu.core_type<tc>, window_params = [{transform_indices = @transform_0, window_bounds = array<i64: 8, 128>}, {pipeline_mode = #tpu.pipeline_mode<synchronous>, transform_indices = @transform_1, window_bounds = array<i64: 128, 256>}, {pipeline_mode = #tpu.pipeline_mode<synchronous>, transform_indices = @transform_2, window_bounds = array<i64: 1, 256>}, {pipeline_mode = #tpu.pipeline_mode<synchronous>, transform_indices = @transform_3, window_bounds = array<i64: 1, 256>}, {pipeline_mode = #tpu.pipeline_mode<synchronous>, transform_indices = @transform_4, window_bounds = array<i64: 1, 256>}, {pipeline_mode = #tpu.pipeline_mode<synchronous>, transform_indices = @transform_5, window_bounds = array<i64: 256, 128>}, {pipeline_mode = #tpu.pipeline_mode<synchronous>, transform_indices = @transform_6, window_bounds = array<i64: 1, 128>}, {pipeline_mode = #tpu.pipeline_mode<synchronous>, transform_indices = @transform_7, window_bounds = array<i64: 1, 128>}, {pipeline_mode = #tpu.pipeline_mode<synchronous>, transform_indices = @transform_8, window_bounds = array<i64: 1, 128>}, {pipeline_mode = #tpu.pipeline_mode<synchronous>, transform_indices = @transform_9, window_bounds = array<i64: 128, 64>}, {pipeline_mode = #tpu.pipeline_mode<synchronous>, transform_indices = @transform_10, window_bounds = array<i64: 1, 64>}, {pipeline_mode = #tpu.pipeline_mode<synchronous>, transform_indices = @transform_11, window_bounds = array<i64: 1, 64>}, {pipeline_mode = #tpu.pipeline_mode<synchronous>, transform_indices = @transform_12, window_bounds = array<i64: 1, 64>}, {pipeline_mode = #tpu.pipeline_mode<synchronous>, transform_indices = @transform_13, window_bounds = array<i64: 64, 2>}, {pipeline_mode = #tpu.pipeline_mode<synchronous>, transform_indices = @transform_14, window_bounds = array<i64: 1, 2>}, {transform_indices = @transform_15, window_bounds = array<i64: 8, 2>}]} {
    %c0 = arith.constant 0 : index
    %c0_0 = arith.constant 0 : index
    %0 = vector.load %arg1[%c0, %c0_0] : memref<8x128xbf16, #tpu.memory_space<vmem>>, vector<8x128xbf16>
    %c0_1 = arith.constant 0 : index
    %c0_2 = arith.constant 0 : index
    %1 = vector.load %arg2[%c0_1, %c0_2] : memref<128x256xbf16, #tpu.memory_space<vmem>>, vector<128x256xbf16>
    %cst = arith.constant dense<0.000000e+00> : vector<8x256xf32>
    %2 = tpu.matmul %0, %1, %cst {dimension_numbers = #tpu.dot_dimension_numbers<[1], [0], [0], [1], [0, 0, 1, 1], [], []>} : vector<8x128xbf16>, vector<128x256xbf16>, vector<8x256xf32> -> vector<8x256xf32>
    %c0_3 = arith.constant 0 : index
    %c0_4 = arith.constant 0 : index
    %3 = vector.load %arg3[%c0_3, %c0_4] : memref<1x256xf32, #tpu.memory_space<vmem>>, vector<1x256xf32>
    %4 = vector.broadcast %3 : vector<1x256xf32> to vector<8x256xf32>
    %5 = arith.addf %2, %4 : vector<8x256xf32>
    %cst_5 = arith.constant 0.000000e+00 : f32
    %6 = vector.broadcast %cst_5 : f32 to vector<8x256xf32>
    %7 = arith.maximumf %5, %6 : vector<8x256xf32>
    %cst_6 = arith.constant dense<0.000000e+00> : vector<8xf32>
    %8 = vector.multi_reduction <add>, %7, %cst_6 [1] : vector<8x256xf32> to vector<8xf32>
    %9 = vector.shape_cast %8 : vector<8xf32> to vector<8x1xf32>
    %cst_7 = arith.constant 2.560000e+02 : f32
    %10 = vector.broadcast %cst_7 : f32 to vector<8x1xf32>
    %11 = arith.divf %9, %10 : vector<8x1xf32>
    %12 = arith.mulf %7, %7 : vector<8x256xf32>
    %cst_8 = arith.constant dense<0.000000e+00> : vector<8xf32>
    %13 = vector.multi_reduction <add>, %12, %cst_8 [1] : vector<8x256xf32> to vector<8xf32>
    %14 = vector.shape_cast %13 : vector<8xf32> to vector<8x1xf32>
    %cst_9 = arith.constant 2.560000e+02 : f32
    %15 = vector.broadcast %cst_9 : f32 to vector<8x1xf32>
    %16 = arith.divf %14, %15 : vector<8x1xf32>
    %17 = arith.mulf %11, %11 : vector<8x1xf32>
    %18 = arith.subf %16, %17 : vector<8x1xf32>
    %19 = vector.broadcast %11 : vector<8x1xf32> to vector<8x256xf32>
    %20 = arith.subf %7, %19 : vector<8x256xf32>
    %cst_10 = arith.constant 9.99999974E-6 : f32
    %21 = vector.broadcast %cst_10 : f32 to vector<8x1xf32>
    %22 = arith.addf %18, %21 : vector<8x1xf32>
    %23 = math.rsqrt %22 : vector<8x1xf32>
    %24 = vector.broadcast %23 : vector<8x1xf32> to vector<8x256xf32>
    %25 = arith.mulf %20, %24 : vector<8x256xf32>
    %c0_11 = arith.constant 0 : index
    %c0_12 = arith.constant 0 : index
    %26 = vector.load %arg4[%c0_11, %c0_12] : memref<1x256xf32, #tpu.memory_space<vmem>>, vector<1x256xf32>
    %27 = vector.broadcast %26 : vector<1x256xf32> to vector<8x256xf32>
    %28 = arith.mulf %25, %27 : vector<8x256xf32>
    %c0_13 = arith.constant 0 : index
    %c0_14 = arith.constant 0 : index
    %29 = vector.load %arg5[%c0_13, %c0_14] : memref<1x256xf32, #tpu.memory_space<vmem>>, vector<1x256xf32>
    %30 = vector.broadcast %29 : vector<1x256xf32> to vector<8x256xf32>
    %31 = arith.addf %28, %30 : vector<8x256xf32>
    %32 = arith.truncf %31 : vector<8x256xf32> to vector<8x256xbf16>
    %c0_15 = arith.constant 0 : index
    %c0_16 = arith.constant 0 : index
    %33 = vector.load %arg6[%c0_15, %c0_16] : memref<256x128xbf16, #tpu.memory_space<vmem>>, vector<256x128xbf16>
    %cst_17 = arith.constant dense<0.000000e+00> : vector<8x128xf32>
    %34 = tpu.matmul %32, %33, %cst_17 {dimension_numbers = #tpu.dot_dimension_numbers<[1], [0], [0], [1], [0, 0, 1, 1], [], []>} : vector<8x256xbf16>, vector<256x128xbf16>, vector<8x128xf32> -> vector<8x128xf32>
    %c0_18 = arith.constant 0 : index
    %c0_19 = arith.constant 0 : index
    %35 = vector.load %arg7[%c0_18, %c0_19] : memref<1x128xf32, #tpu.memory_space<vmem>>, vector<1x128xf32>
    %36 = vector.broadcast %35 : vector<1x128xf32> to vector<8x128xf32>
    %37 = arith.addf %34, %36 : vector<8x128xf32>
    %cst_20 = arith.constant 0.000000e+00 : f32
    %38 = vector.broadcast %cst_20 : f32 to vector<8x128xf32>
    %39 = arith.maximumf %37, %38 : vector<8x128xf32>
    %cst_21 = arith.constant dense<0.000000e+00> : vector<8xf32>
    %40 = vector.multi_reduction <add>, %39, %cst_21 [1] : vector<8x128xf32> to vector<8xf32>
    %41 = vector.shape_cast %40 : vector<8xf32> to vector<8x1xf32>
    %cst_22 = arith.constant 1.280000e+02 : f32
    %42 = vector.broadcast %cst_22 : f32 to vector<8x1xf32>
    %43 = arith.divf %41, %42 : vector<8x1xf32>
    %44 = arith.mulf %39, %39 : vector<8x128xf32>
    %cst_23 = arith.constant dense<0.000000e+00> : vector<8xf32>
    %45 = vector.multi_reduction <add>, %44, %cst_23 [1] : vector<8x128xf32> to vector<8xf32>
    %46 = vector.shape_cast %45 : vector<8xf32> to vector<8x1xf32>
    %cst_24 = arith.constant 1.280000e+02 : f32
    %47 = vector.broadcast %cst_24 : f32 to vector<8x1xf32>
    %48 = arith.divf %46, %47 : vector<8x1xf32>
    %49 = arith.mulf %43, %43 : vector<8x1xf32>
    %50 = arith.subf %48, %49 : vector<8x1xf32>
    %51 = vector.broadcast %43 : vector<8x1xf32> to vector<8x128xf32>
    %52 = arith.subf %39, %51 : vector<8x128xf32>
    %cst_25 = arith.constant 9.99999974E-6 : f32
    %53 = vector.broadcast %cst_25 : f32 to vector<8x1xf32>
    %54 = arith.addf %50, %53 : vector<8x1xf32>
    %55 = math.rsqrt %54 : vector<8x1xf32>
    %56 = vector.broadcast %55 : vector<8x1xf32> to vector<8x128xf32>
    %57 = arith.mulf %52, %56 : vector<8x128xf32>
    %c0_26 = arith.constant 0 : index
    %c0_27 = arith.constant 0 : index
    %58 = vector.load %arg8[%c0_26, %c0_27] : memref<1x128xf32, #tpu.memory_space<vmem>>, vector<1x128xf32>
    %59 = vector.broadcast %58 : vector<1x128xf32> to vector<8x128xf32>
    %60 = arith.mulf %57, %59 : vector<8x128xf32>
    %c0_28 = arith.constant 0 : index
    %c0_29 = arith.constant 0 : index
    %61 = vector.load %arg9[%c0_28, %c0_29] : memref<1x128xf32, #tpu.memory_space<vmem>>, vector<1x128xf32>
    %62 = vector.broadcast %61 : vector<1x128xf32> to vector<8x128xf32>
    %63 = arith.addf %60, %62 : vector<8x128xf32>
    %64 = arith.truncf %63 : vector<8x128xf32> to vector<8x128xbf16>
    %c0_30 = arith.constant 0 : index
    %c0_31 = arith.constant 0 : index
    %65 = vector.load %arg10[%c0_30, %c0_31] : memref<128x64xbf16, #tpu.memory_space<vmem>>, vector<128x64xbf16>
    %cst_32 = arith.constant dense<0.000000e+00> : vector<8x64xf32>
    %66 = tpu.matmul %64, %65, %cst_32 {dimension_numbers = #tpu.dot_dimension_numbers<[1], [0], [0], [1], [0, 0, 1, 1], [], []>} : vector<8x128xbf16>, vector<128x64xbf16>, vector<8x64xf32> -> vector<8x64xf32>
    %c0_33 = arith.constant 0 : index
    %c0_34 = arith.constant 0 : index
    %67 = vector.load %arg11[%c0_33, %c0_34] : memref<1x64xf32, #tpu.memory_space<vmem>>, vector<1x64xf32>
    %68 = vector.broadcast %67 : vector<1x64xf32> to vector<8x64xf32>
    %69 = arith.addf %66, %68 : vector<8x64xf32>
    %cst_35 = arith.constant 0.000000e+00 : f32
    %70 = vector.broadcast %cst_35 : f32 to vector<8x64xf32>
    %71 = arith.maximumf %69, %70 : vector<8x64xf32>
    %cst_36 = arith.constant dense<0.000000e+00> : vector<8xf32>
    %72 = vector.multi_reduction <add>, %71, %cst_36 [1] : vector<8x64xf32> to vector<8xf32>
    %73 = vector.shape_cast %72 : vector<8xf32> to vector<8x1xf32>
    %cst_37 = arith.constant 6.400000e+01 : f32
    %74 = vector.broadcast %cst_37 : f32 to vector<8x1xf32>
    %75 = arith.divf %73, %74 : vector<8x1xf32>
    %76 = arith.mulf %71, %71 : vector<8x64xf32>
    %cst_38 = arith.constant dense<0.000000e+00> : vector<8xf32>
    %77 = vector.multi_reduction <add>, %76, %cst_38 [1] : vector<8x64xf32> to vector<8xf32>
    %78 = vector.shape_cast %77 : vector<8xf32> to vector<8x1xf32>
    %cst_39 = arith.constant 6.400000e+01 : f32
    %79 = vector.broadcast %cst_39 : f32 to vector<8x1xf32>
    %80 = arith.divf %78, %79 : vector<8x1xf32>
    %81 = arith.mulf %75, %75 : vector<8x1xf32>
    %82 = arith.subf %80, %81 : vector<8x1xf32>
    %83 = vector.broadcast %75 : vector<8x1xf32> to vector<8x64xf32>
    %84 = arith.subf %71, %83 : vector<8x64xf32>
    %cst_40 = arith.constant 9.99999974E-6 : f32
    %85 = vector.broadcast %cst_40 : f32 to vector<8x1xf32>
    %86 = arith.addf %82, %85 : vector<8x1xf32>
    %87 = math.rsqrt %86 : vector<8x1xf32>
    %88 = vector.broadcast %87 : vector<8x1xf32> to vector<8x64xf32>
    %89 = arith.mulf %84, %88 : vector<8x64xf32>
    %c0_41 = arith.constant 0 : index
    %c0_42 = arith.constant 0 : index
    %90 = vector.load %arg12[%c0_41, %c0_42] : memref<1x64xf32, #tpu.memory_space<vmem>>, vector<1x64xf32>
    %91 = vector.broadcast %90 : vector<1x64xf32> to vector<8x64xf32>
    %92 = arith.mulf %89, %91 : vector<8x64xf32>
    %c0_43 = arith.constant 0 : index
    %c0_44 = arith.constant 0 : index
    %93 = vector.load %arg13[%c0_43, %c0_44] : memref<1x64xf32, #tpu.memory_space<vmem>>, vector<1x64xf32>
    %94 = vector.broadcast %93 : vector<1x64xf32> to vector<8x64xf32>
    %95 = arith.addf %92, %94 : vector<8x64xf32>
    %96 = arith.truncf %95 : vector<8x64xf32> to vector<8x64xbf16>
    %c0_45 = arith.constant 0 : index
    %c0_46 = arith.constant 0 : index
    %97 = vector.load %arg14[%c0_45, %c0_46] : memref<64x2xbf16, #tpu.memory_space<vmem>>, vector<64x2xbf16>
    %cst_47 = arith.constant dense<0.000000e+00> : vector<8x2xf32>
    %98 = tpu.matmul %96, %97, %cst_47 {dimension_numbers = #tpu.dot_dimension_numbers<[1], [0], [0], [1], [0, 0, 1, 1], [], []>} : vector<8x64xbf16>, vector<64x2xbf16>, vector<8x2xf32> -> vector<8x2xf32>
    %c0_48 = arith.constant 0 : index
    %c0_49 = arith.constant 0 : index
    %99 = vector.load %arg15[%c0_48, %c0_49] : memref<1x2xf32, #tpu.memory_space<vmem>>, vector<1x2xf32>
    %100 = vector.broadcast %99 : vector<1x2xf32> to vector<8x2xf32>
    %101 = arith.addf %98, %100 : vector<8x2xf32>
    %102 = arith.negf %101 : vector<8x2xf32>
    %103 = math.exp %102 : vector<8x2xf32>
    %cst_50 = arith.constant 1.000000e+00 : f32
    %104 = vector.broadcast %cst_50 : f32 to vector<8x2xf32>
    %105 = arith.addf %104, %103 : vector<8x2xf32>
    %106 = arith.divf %104, %105 : vector<8x2xf32>
    %107 = tpu.iota {dimensions = array<i32: 1>} : vector<1x2xi32>
    %c0_i32 = arith.constant 0 : i32
    %108 = vector.broadcast %c0_i32 : i32 to vector<1x2xi32>
    %109 = arith.cmpi eq, %107, %108 : vector<1x2xi32>
    %cst_51 = arith.constant 2.500000e+00 : f32
    %cst_52 = arith.constant 4.000000e+00 : f32
    %110 = vector.broadcast %cst_51 : f32 to vector<1x2xf32>
    %111 = vector.broadcast %cst_52 : f32 to vector<1x2xf32>
    %112 = arith.select %109, %110, %111 : vector<1x2xi1>, vector<1x2xf32>
    %c0_i32_53 = arith.constant 0 : i32
    %113 = vector.broadcast %c0_i32_53 : i32 to vector<1x2xi32>
    %114 = arith.cmpi eq, %107, %113 : vector<1x2xi32>
    %cst_54 = arith.constant 5.000000e-01 : f32
    %cst_55 = arith.constant 1.000000e+00 : f32
    %115 = vector.broadcast %cst_54 : f32 to vector<1x2xf32>
    %116 = vector.broadcast %cst_55 : f32 to vector<1x2xf32>
    %117 = arith.select %114, %115, %116 : vector<1x2xi1>, vector<1x2xf32>
    %118 = vector.broadcast %112 : vector<1x2xf32> to vector<8x2xf32>
    %119 = arith.mulf %106, %118 : vector<8x2xf32>
    %120 = vector.broadcast %117 : vector<1x2xf32> to vector<8x2xf32>
    %121 = arith.addf %119, %120 : vector<8x2xf32>
    %c0_56 = arith.constant 0 : index
    %c0_57 = arith.constant 0 : index
    %122 = vector.load %arg16[%c0_56, %c0_57] : memref<8x2xf32, #tpu.memory_space<vmem>>, vector<8x2xf32>
    tpu.vector_store %arg16[%c0_56, %c0_57], %121 {strides = array<i32>} : memref<8x2xf32, #tpu.memory_space<vmem>>, vector<8x2xf32>,
    return
  }
  func.func @transform_0(%arg0: i32) -> (i32, i32) {
    %c0_i32 = arith.constant 0 : i32
    %c0_i32_0 = arith.constant 0 : i32
    return %arg0, %c0_i32 : i32, i32
  }
  func.func @transform_1(%arg0: i32) -> (i32, i32) {
    %c0_i32 = arith.constant 0 : i32
    %c0_i32_0 = arith.constant 0 : i32
    %c0_i32_1 = arith.constant 0 : i32
    return %c0_i32, %c0_i32_0 : i32, i32
  }
  func.func @transform_2(%arg0: i32) -> (i32, i32) {
    %c0_i32 = arith.constant 0 : i32
    %c0_i32_0 = arith.constant 0 : i32
    %c0_i32_1 = arith.constant 0 : i32
    return %c0_i32, %c0_i32_0 : i32, i32
  }
  func.func @transform_3(%arg0: i32) -> (i32, i32) {
    %c0_i32 = arith.constant 0 : i32
    %c0_i32_0 = arith.constant 0 : i32
    %c0_i32_1 = arith.constant 0 : i32
    return %c0_i32, %c0_i32_0 : i32, i32
  }
  func.func @transform_4(%arg0: i32) -> (i32, i32) {
    %c0_i32 = arith.constant 0 : i32
    %c0_i32_0 = arith.constant 0 : i32
    %c0_i32_1 = arith.constant 0 : i32
    return %c0_i32, %c0_i32_0 : i32, i32
  }
  func.func @transform_5(%arg0: i32) -> (i32, i32) {
    %c0_i32 = arith.constant 0 : i32
    %c0_i32_0 = arith.constant 0 : i32
    %c0_i32_1 = arith.constant 0 : i32
    return %c0_i32, %c0_i32_0 : i32, i32
  }
  func.func @transform_6(%arg0: i32) -> (i32, i32) {
    %c0_i32 = arith.constant 0 : i32
    %c0_i32_0 = arith.constant 0 : i32
    %c0_i32_1 = arith.constant 0 : i32
    return %c0_i32, %c0_i32_0 : i32, i32
  }
  func.func @transform_7(%arg0: i32) -> (i32, i32) {
    %c0_i32 = arith.constant 0 : i32
    %c0_i32_0 = arith.constant 0 : i32
    %c0_i32_1 = arith.constant 0 : i32
    return %c0_i32, %c0_i32_0 : i32, i32
  }
  func.func @transform_8(%arg0: i32) -> (i32, i32) {
    %c0_i32 = arith.constant 0 : i32
    %c0_i32_0 = arith.constant 0 : i32
    %c0_i32_1 = arith.constant 0 : i32
    return %c0_i32, %c0_i32_0 : i32, i32
  }
  func.func @transform_9(%arg0: i32) -> (i32, i32) {
    %c0_i32 = arith.constant 0 : i32
    %c0_i32_0 = arith.constant 0 : i32
    %c0_i32_1 = arith.constant 0 : i32
    return %c0_i32, %c0_i32_0 : i32, i32
  }
  func.func @transform_10(%arg0: i32) -> (i32, i32) {
    %c0_i32 = arith.constant 0 : i32
    %c0_i32_0 = arith.constant 0 : i32
    %c0_i32_1 = arith.constant 0 : i32
    return %c0_i32, %c0_i32_0 : i32, i32
  }
  func.func @transform_11(%arg0: i32) -> (i32, i32) {
    %c0_i32 = arith.constant 0 : i32
    %c0_i32_0 = arith.constant 0 : i32
    %c0_i32_1 = arith.constant 0 : i32
    return %c0_i32, %c0_i32_0 : i32, i32
  }
  func.func @transform_12(%arg0: i32) -> (i32, i32) {
    %c0_i32 = arith.constant 0 : i32
    %c0_i32_0 = arith.constant 0 : i32
    %c0_i32_1 = arith.constant 0 : i32
    return %c0_i32, %c0_i32_0 : i32, i32
  }
  func.func @transform_13(%arg0: i32) -> (i32, i32) {
    %c0_i32 = arith.constant 0 : i32
    %c0_i32_0 = arith.constant 0 : i32
    %c0_i32_1 = arith.constant 0 : i32
    return %c0_i32, %c0_i32_0 : i32, i32
  }
  func.func @transform_14(%arg0: i32) -> (i32, i32) {
    %c0_i32 = arith.constant 0 : i32
    %c0_i32_0 = arith.constant 0 : i32
    %c0_i32_1 = arith.constant 0 : i32
    return %c0_i32, %c0_i32_0 : i32, i32
  }
  func.func @transform_15(%arg0: i32) -> (i32, i32) {
    %c0_i32 = arith.constant 0 : i32
    %c0_i32_0 = arith.constant 0 : i32
    return %arg0, %c0_i32 : i32, i32
  }
}

</mosaic_0001>

<bundles_post_ra>
// kernel: tpu_custom_call.1
= control target key start
LH: loop header
LB: loop body
LE: loop exit
PB: predicated region body
PF: predicated region fallthrough
CT: control target
= control target key end

     0   :  { %20 = vsyncpa [#allocation3], 0  ;;  %s1424_s0 = inlined_call_operand.hbm [shape: bf16[8,128], index: 0, kind: input, shape index: {}]   ;;  %s1425_s1 = inlined_call_operand.vmem [shape: bf16[128,256], index: 1, kind: input, shape index: {}]   ;;  %s1426_s2 = inlined_call_operand.vmem [shape: f32[1,256], index: 2, kind: input, shape index: {}]   ;;  %s1427_s3 = inlined_call_operand.hbm [shape: f32[1,256], index: 3, kind: input, shape index: {}]   ;;  %s1428_s4 = inlined_call_operand.hbm [shape: f32[1,256], index: 4, kind: input, shape index: {}]   ;;  %s1429_s5 = inlined_call_operand.hbm [shape: bf16[256,128], index: 5, kind: input, shape index: {}]   ;;  %s1430_s6 = inlined_call_operand.vmem [shape: f32[1,128], index: 6, kind: input, shape index: {}]   ;;  %s1431_s7 = inlined_call_operand.hbm [shape: f32[1,128], index: 7, kind: input, shape index: {}]   ;;  %s1432_s8 = inlined_call_operand.hbm [shape: f32[1,128], index: 8, kind: input, shape index: {}]   ;;  %s1433_s9 = inlined_call_operand.vmem [shape: bf16[128,64], index: 9, kind: input, shape index: {}]   ;;  %s1434_s10 = inlined_call_operand.vmem [shape: f32[1,64], index: 10, kind: input, shape index: {}]   ;;  %s1435_s11 = inlined_call_operand.vmem [shape: f32[1,64], index: 11, kind: input, shape index: {}]   ;;  %s1436_s12 = inlined_call_operand.vmem [shape: f32[1,64], index: 12, kind: input, shape index: {}]   ;;  %s1437_s13 = inlined_call_operand.vmem [shape: bf16[64,2], index: 13, kind: input, shape index: {}]   ;;  %s1438_s14 = inlined_call_operand.vmem [shape: f32[1,2], index: 14, kind: input, shape index: {}]   ;;  %s1439_s15 = inlined_call_operand.vmem [shape: f32[8,2], index: 15, kind: output, shape index: {}]  }
   0x1   :  { %21 = vsyncpa [#allocation5], 0 }
   0x2   :  { %22 = vsyncpa [#allocation8], 0 }
   0x3   :  { %23 = vsyncpa [#allocation11], 0  ;;  %s1118_s18 = smov [#allocation4]   ;;  %s1119_s20 = smov [#allocation7]  }
   0x4   :  { %s44_s19 = sshll.u32 %s1118_s18, 4  ;;  %s63_s21 = sshll.u32 %s1119_s20, 4  ;;  %s45_s19 = int_to_ptr.vmem [resolvable:$true] %s44_s19  ;;  %s1211_s21 = int_to_ptr.vmem [resolvable:$true] %s63_s21 }
   0x5   :  { %s978_s24 = scalar_lea.hbm %s1427_s3, 32 }
   0x6   :  { %p979_p0 = scmp.ne.s32.totalorder %s1427_s3, %s978_s24  ;;  %p982_p1 = scmp.lt.u32.totalorder %s978_s24, %s1427_s3 }
   0x8   :  { %p984_p2 = pnand %p982_p1, %p979_p0 }
   0xa   :  { %987 = shalt.err (!%p984_p2)
}
   0xb   :  { %s988_s29 = scalar_lea.vmem %s45_s19, 32  ;;  %p993_p4 = scmp.lt.s32.totalorder %s45_s19, %s45_s19 }
   0xc   :  { %p989_p3 = scmp.ne.s32.totalorder %s45_s19, %s988_s29  ;;  %p994_p5 = scmp.lt.s32.totalorder %s988_s29, %s988_s29 }
   0xe   :  { %p995_p6 = por %p994_p5, %p993_p4 }
  0x10   :  { %p996_p7 = pnand %p995_p6, %p989_p3 }
  0x12   :  { %999 = shalt.err (!%p996_p7)
}
  0x13   :  { %47 = dma.hbm_to_vmem [thread:$0]  %s1427_s3, 32, %s45_s19, [#allocation5]  }
  0x14   :  { %s1000_s20 = scalar_lea.hbm %s1429_s5, 2048 }
  0x15   :  { %p1001_p8 = scmp.ne.s32.totalorder %s1429_s5, %s1000_s20  ;;  %p1004_p9 = scmp.lt.u32.totalorder %s1000_s20, %s1429_s5 }
  0x17   :  { %p1006_p10 = pnand %p1004_p9, %p1001_p8 }
  0x19   :  { %1009 = shalt.err (!%p1006_p10)
}
  0x1a   :  { %s1010_s26 = scalar_lea.vmem %s1211_s21, 2048  ;;  %p1015_p12 = scmp.lt.s32.totalorder %s1211_s21, %s1211_s21 }
  0x1b   :  { %p1011_p11 = scmp.ne.s32.totalorder %s1211_s21, %s1010_s26  ;;  %p1016_p13 = scmp.lt.s32.totalorder %s1010_s26, %s1010_s26 }
  0x1d   :  { %p1017_p0 = por %p1016_p13, %p1015_p12 }
  0x1f   :  { %p1018_p1 = pnand %p1017_p0, %p1011_p11 }
  0x21   :  { %1021 = shalt.err (!%p1018_p1)
}
  0x22   :  { %s1120_s3 = smov 64   ;;  %s1121_s19 = smov 4  }
  0x23   :  { %69 = dma.hbm_to_vmem [thread:$0]  %s1429_s5, 2048, %s1211_s21, [#allocation8], %s1120_s3, %s1120_s3, %s1121_s19  }
  0x24   :  { %s1122_s29 = smov [#allocation2]   ;;  %s1123_s16 = smov [#allocation6]  }
  0x25   :  { %s30_s30 = sshll.u32 %s1122_s29, 4  ;;  %s54_s17 = sshll.u32 %s1123_s16, 4  ;;  %s31_s30 = int_to_ptr.vmem [resolvable:$true] %s30_s30  ;;  %s55_s17 = int_to_ptr.vmem [resolvable:$true] %s54_s17 }
  0x26   :  { %s1022_s22 = scalar_lea.hbm %s1424_s0, 64 }
  0x27   :  { %p1023_p2 = scmp.ne.s32.totalorder %s1424_s0, %s1022_s22  ;;  %p1026_p3 = scmp.lt.u32.totalorder %s1022_s22, %s1424_s0 }
  0x29   :  { %p1028_p4 = pnand %p1026_p3, %p1023_p2 }
  0x2b   :  { %1031 = shalt.err (!%p1028_p4)
}
  0x2c   :  { %s1032_s5 = scalar_lea.vmem %s31_s30, 64  ;;  %p1037_p6 = scmp.lt.s32.totalorder %s31_s30, %s31_s30 }
  0x2d   :  { %p1033_p5 = scmp.ne.s32.totalorder %s31_s30, %s1032_s5  ;;  %p1038_p7 = scmp.lt.s32.totalorder %s1032_s5, %s1032_s5 }
  0x2f   :  { %p1039_p8 = por %p1038_p7, %p1037_p6 }
  0x31   :  { %p1040_p9 = pnand %p1039_p8, %p1033_p5 }
  0x33   :  { %1043 = shalt.err (!%p1040_p9)
}
  0x34   :  { %33 = dma.hbm_to_vmem [thread:$0]  %s1424_s0, 64, %s31_s30, [#allocation3]  }
  0x35   :  { %s1044_s28 = scalar_lea.hbm %s1428_s4, 32 }
  0x36   :  { %p1045_p10 = scmp.ne.s32.totalorder %s1428_s4, %s1044_s28  ;;  %p1048_p11 = scmp.lt.u32.totalorder %s1044_s28, %s1428_s4 }
  0x38   :  { %p1050_p12 = pnand %p1048_p11, %p1045_p10 }
  0x3a   :  { %1053 = shalt.err (!%p1050_p12)
}
  0x3b   :  { %s1054_s22 = scalar_lea.vmem %s55_s17, 32  ;;  %p1059_p0 = scmp.lt.s32.totalorder %s55_s17, %s55_s17 }
  0x3c   :  { %p1055_p13 = scmp.ne.s32.totalorder %s55_s17, %s1054_s22  ;;  %p1060_p1 = scmp.lt.s32.totalorder %s1054_s22, %s1054_s22 }
  0x3e   :  { %p1061_p2 = por %p1060_p1, %p1059_p0 }
  0x40   :  { %p1062_p3 = pnand %p1061_p2, %p1055_p13 }
  0x42   :  { %1065 = shalt.err (!%p1062_p3)
}
  0x43   :  { %57 = dma.hbm_to_vmem [thread:$0]  %s1428_s4, 32, %s55_s17, [#allocation5]  }
  0x44   :  { %s1124_s23 = smov [#allocation9]   ;;  %s1125_s25 = smov [#allocation10]  }
  0x45   :  { %s78_s24 = sshll.u32 %s1124_s23, 4  ;;  %s88_s26 = sshll.u32 %s1125_s25, 4  ;;  %s79_s24 = int_to_ptr.vmem [resolvable:$true] %s78_s24  ;;  %s89_s26 = int_to_ptr.vmem [resolvable:$true] %s88_s26 }
  0x46   :  { %s1066_s3 = scalar_lea.hbm %s1431_s7, 16 }
  0x47   :  { %p1067_p4 = scmp.ne.s32.totalorder %s1431_s7, %s1066_s3  ;;  %p1070_p5 = scmp.lt.u32.totalorder %s1066_s3, %s1431_s7 }
  0x49   :  { %p1072_p6 = pnand %p1070_p5, %p1067_p4 }
  0x4b   :  { %1075 = shalt.err (!%p1072_p6)
}
  0x4c   :  { %s1076_s4 = scalar_lea.vmem %s79_s24, 16  ;;  %s1080_s17 = scalar_lea.vmem %s79_s24, 32 }
  0x4d   :  { %p1077_p7 = scmp.ne.s32.totalorder %s79_s24, %s1076_s4  ;;  %p1081_p8 = scmp.lt.s32.totalorder %s79_s24, %s79_s24 }
  0x4e   :  { %p1082_p9 = scmp.lt.s32.totalorder %s1080_s17, %s1076_s4 }
  0x50   :  { %p1083_p10 = por %p1082_p9, %p1081_p8 }
  0x52   :  { %p1084_p11 = pnand %p1083_p10, %p1077_p7 }
  0x54   :  { %1087 = shalt.err (!%p1084_p11)
}
  0x55   :  { %81 = dma.hbm_to_vmem [thread:$0]  %s1431_s7, 16, %s79_s24, [#allocation8]  }
  0x56   :  { %s1088_s0 = scalar_lea.hbm %s1432_s8, 16 }
  0x57   :  { %p1089_p12 = scmp.ne.s32.totalorder %s1432_s8, %s1088_s0  ;;  %p1092_p13 = scmp.lt.u32.totalorder %s1088_s0, %s1432_s8 }
  0x59   :  { %p1094_p0 = pnand %p1092_p13, %p1089_p12 }
  0x5b   :  { %1097 = shalt.err (!%p1094_p0)
}
  0x5c   :  { %s1098_s21 = scalar_lea.vmem %s89_s26, 16  ;;  %s1102_s3 = scalar_lea.vmem %s89_s26, 32 }
  0x5d   :  { %p1099_p1 = scmp.ne.s32.totalorder %s89_s26, %s1098_s21  ;;  %p1103_p2 = scmp.lt.s32.totalorder %s89_s26, %s89_s26 }
  0x5e   :  { %p1104_p3 = scmp.lt.s32.totalorder %s1102_s3, %s1098_s21 }
  0x60   :  { %p1105_p4 = por %p1104_p3, %p1103_p2 }
  0x62   :  { %p1106_p5 = pnand %p1105_p4, %p1099_p1 }
  0x64   :  { %1109 = shalt.err (!%p1106_p5)
}
  0x65   :  { %91 = dma.hbm_to_vmem [thread:$0]  %s1432_s8, 16, %s89_s26, [#allocation11]  }
  0x66   :  { %1110 = dma.done.wait [#allocation3], 64  }
  0x67   :  { %1111 = vsyncadd [#allocation3], 4294967232 }
  0x68   :  { %1112 = dma.done.wait [#allocation5], 64  }
  0x69   :  { %1113 = vsyncadd [#allocation5], 4294967232 }
  0x6a   :  { %1114 = dma.done.wait [#allocation8], 2064  }
  0x6b   :  { %1115 = vsyncadd [#allocation8], 4294965232 }
  0x6c   :  { %1116 = dma.done.wait [#allocation11], 16  }
  0x6d   :  { %1117 = vsyncadd [#allocation11], 4294967280  ;;  %v1126_v0 = vmov 0   ;;  %v916_v1 = vld [vmem:[%s1425_s1 + $0x4] ss:$8 sps:$4 sm:$0xff]   ;;  %v142_v20 = vlaneseq  ;;  %v942_v39 = vld [vmem:[#allocation7 + $0x48] sm:$0xff]  }
  0x6e   :  { %264 = vmatprep.mubr.bf16.mxu0 %v1126_v0  ;;  %v918_v2 = vld [vmem:[%s1425_s1] ss:$8 sps:$4 sm:$0xff]   ;;  %232 = vmatprep.subr.bf16.mxu0 %v916_v1  ;;  %v919_v3 = vld [vmem:[%s1425_s1 + $0x14] ss:$8 sps:$4 sm:$0xff]   ;;  %v921_v4 = vld [vmem:[%s1425_s1 + $0x10] ss:$8 sps:$4 sm:$0xff]  }
  0x6f   :  { %233 = vmatpush1.bf16.msra.mxu0 %v918_v2  ;;  %v922_v5 = vld [vmem:[%s1425_s1 + $0x24] ss:$8 sps:$4 sm:$0xff]   ;;  %v924_v6 = vld [vmem:[%s1425_s1 + $0x20] ss:$8 sps:$4 sm:$0xff]   ;;  %v925_v7 = vld [vmem:[%s1425_s1 + $0x34] ss:$8 sps:$4 sm:$0xff]  }
  0x70   :  { %234 = vmatprep.subr.bf16.mxu0 %v919_v3  ;;  %v927_v8 = vld [vmem:[%s1425_s1 + $0x30] ss:$8 sps:$4 sm:$0xff]   ;;  %v928_v9 = vld [vmem:[%s1425_s1 + $0x44] ss:$8 sps:$4 sm:$0xff]   ;;  %v930_v10 = vld [vmem:[%s1425_s1 + $0x40] ss:$8 sps:$4 sm:$0xff]  }
  0x71   :  { %v931_v11 = vld [vmem:[%s1425_s1 + $0x54] ss:$8 sps:$4 sm:$0xff]   ;;  %v933_v12 = vld [vmem:[%s1425_s1 + $0x50] ss:$8 sps:$4 sm:$0xff]   ;;  %v934_v13 = vld [vmem:[%s1425_s1 + $0x64] ss:$8 sps:$4 sm:$0xff]  }
  0x72   :  { %v936_v14 = vld [vmem:[%s1425_s1 + $0x60] ss:$8 sps:$4 sm:$0xff]   ;;  %v937_v15 = vld [vmem:[%s1425_s1 + $0x74] ss:$8 sps:$4 sm:$0xff]   ;;  %v939_v16 = vld [vmem:[%s1425_s1 + $0x70] ss:$8 sps:$4 sm:$0xff]  }
  0x73   :  { %235 = vmatpush1.bf16.msra.mxu0 %v921_v4  ;;  %v123_v17 = vld [vmem:[#allocation2] sm:$0xf]  ;;  %v940_v18 = vld [vmem:[#allocation7 + $0x40] sm:$0xff]   ;;  %v143_v21 = vshrl.u32 %v142_v20, 7  ;;  %v943_v40 = vld [vmem:[#allocation7 + $0x8] sm:$0xff]   ;;  %vm1128_vm0 = vmmov 0  }
  0x74   :  { %236 = vmatprep.subr.bf16.mxu0 %v922_v5  ;;  %v941_v19 = vld [vmem:[#allocation7] sm:$0xff]   ;;  %835 = vmatprep.subr.bf16.mxu1 %v940_v18  ;;  %v140_v23 = vld [vmem:[%s1426_s2] sm:$0x3]  ;;  %v944_v41 = vld [vmem:[#allocation7 + $0x50] sm:$0xff]   ;;  %vm643_vm1 = vcmask 523264   ;;  %vm772_vm3 = vcmask 15360  }
  0x75   :  { %836 = vmatpush3.bf16.msra.mxu1 %v941_v19  ;;  %v1339_v22 = vsub.s32 0, %v143_v21  ;;  %v1344_v24 = vsub.s32 1, %v143_v21  ;;  %v945_v42 = vld [vmem:[#allocation7 + $0x10] sm:$0xff]   ;;  %v946_v43 = vld [vmem:[#allocation7 + $0x58] sm:$0xff]   ;;  %v948_v45 = vld [vmem:[#allocation7 + $0x60] sm:$0xff]  }
  0x76   :  { %837 = vmatprep.subr.bf16.mxu1 %v942_v39  ;;  %v947_v44 = vld [vmem:[#allocation7 + $0x18] sm:$0xff]   ;;  %v949_v46 = vld [vmem:[#allocation7 + $0x20] sm:$0xff]   ;;  %v950_v47 = vld [vmem:[#allocation7 + $0x68] sm:$0xff]  }
  0x77   :  { %237 = vmatpush1.bf16.msra.mxu0 %v924_v6  ;;  %v145_v25 = vrot.slane %v140_v23, %v1339_v22  ;;  %v149_v26 = vrot.slane %v140_v23, %v1344_v24  ;;  %v951_v48 = vld [vmem:[#allocation7 + $0x28] sm:$0xff]   ;;  %v952_v49 = vld [vmem:[#allocation7 + $0x70] sm:$0xff]   ;;  %v954_v51 = vld [vmem:[#allocation7 + $0x78] sm:$0xff]  }
  0x78   :  { %238 = vmatprep.subr.bf16.mxu0 %v925_v7  ;;  %v953_v50 = vld [vmem:[#allocation7 + $0x30] sm:$0xff]   ;;  %v955_v52 = vld [vmem:[#allocation7 + $0x38] sm:$0xff]  }
  0x79   :  { %838 = vmatpush3.bf16.msra.mxu1 %v943_v40  ;;  %v294_v60 = vld [vmem:[#allocation4] sm:$0x3]  ;;  %v308_v61 = vld [vmem:[#allocation6] sm:$0x3] }
  0x7a   :  { %839 = vmatprep.subr.bf16.mxu1 %v944_v41  ;;  %v299_v0 = vrot.slane %v294_v60, %v1339_v22  ;;  %v303_v1 = vrot.slane %v294_v60, %v1344_v24  ;;  %v313_v4 = vrot.slane %v308_v61, %v1339_v22  ;;  %v317_v5 = vrot.slane %v308_v61, %v1344_v24  ;;  %v815_v41 = vld [vmem:[#allocation9] ss:$0 sm:$0xff]  ;;  %v967_v60 = vld [vmem:[%s1437_s13 + $0x18] sm:$0xff]  }
  0x7b   :  { %239 = vmatpush1.bf16.msra.mxu0 %v927_v8 }
  0x7c   :  { %240 = vmatprep.subr.bf16.mxu0 %v928_v9 }
  0x7d   :  { %840 = vmatpush3.bf16.msra.mxu1 %v945_v42 }
  0x7e   :  { %841 = vmatprep.subr.bf16.mxu1 %v946_v43  ;;  %v816_v43 = vld [vmem:[#allocation10] ss:$0 sm:$0xff] }
  0x7f   :  { %241 = vmatpush1.bf16.msra.mxu0 %v930_v10 }
  0x80   :  { %242 = vmatprep.subr.bf16.mxu0 %v931_v11 }
  0x81   :  { %842 = vmatpush3.bf16.msra.mxu1 %v947_v44 }
  0x82   :  { %843 = vmatprep.subr.bf16.mxu1 %v948_v45 }
  0x83   :  { %243 = vmatpush1.bf16.msra.mxu0 %v933_v12 }
  0x84   :  { %244 = vmatprep.subr.bf16.mxu0 %v934_v13  ;;  %v956_v13 = vld [vmem:[%s1433_s9] sm:$0xff]  }
  0x85   :  { %844 = vmatpush3.bf16.msra.mxu1 %v949_v46 }
  0x86   :  { %845 = vmatprep.subr.bf16.mxu1 %v950_v47  ;;  %v817_v47 = vld [vmem:[%s1434_s10] ss:$0 sm:$0xff] }
  0x87   :  { %245 = vmatpush1.bf16.msra.mxu0 %v936_v14  ;;  %v1127_v14 = vmov 0.0  }
  0x88   :  { %246 = vmatprep.subr.bf16.mxu0 %v937_v15 }
  0x89   :  { %846 = vmatpush3.bf16.msra.mxu1 %v951_v48 }
  0x8a   :  { %847 = vmatprep.subr.bf16.mxu1 %v952_v49 }
  0x8b   :  { %247 = vmatpush1.bf16.msra.mxu0 %v939_v16  ;;  %v798_v16 = vld [vmem:[%s1430_s6] ss:$0 sm:$0xff] }
  0x8c   :  { %871 = vmatprep.subr.bf16.mxu0 %v1127_v14 }
  0x8d   :  { %848 = vmatpush3.bf16.msra.mxu1 %v953_v50 }
  0x8e   :  { %265 = vmatmul.mubr.bf16.vlgmr.msra.gmra.mrb[0].mxu0 %v123_v17  ;;  %849 = vmatprep.subr.bf16.mxu1 %v954_v51 }
  0x8f   :  { %872 = vmatpush3.bf16.msra.mxu0 %v956_v13  ;;  %887 = vmatprep.mubr.msk.bf16.mxu0 %vm1128_vm0, %v1127_v14 }
  0x90   :  { %873 = vmatprep.subr.bf16.mxu0 %v1127_v14 }
  0x91   :  { %850 = vmatpush3.bf16.msra.mxu1 %v955_v52 }
  0x92   :  { %891 = vmatprep.subr.bf16.mxu1 %v1127_v14 }
 0x161   :  { %v266_v27 = vpop.f32.mrb[0].mxu0 }
 0x162   :  { %v267_v28 = vadd.f32 %v266_v27, %v145_v25  ;;  %v268_v29 = vpop.f32.mrb[1].mxu0  ;;  %v957_v25 = vld [vmem:[%s1433_s9 + $0x8] sm:$0xff]   ;;  %v959_v27 = vld [vmem:[%s1433_s9 + $0x18] sm:$0xff]  }
 0x163   :  { %v269_v30 = vadd.f32 %v268_v29, %v149_v26  ;;  %v270_v31 = vpop.f32.mrb[2].mxu0  ;;  %874 = vmatpush3.bf16.msra.mxu0 %v957_v25  ;;  %v958_v26 = vld [vmem:[%s1433_s9 + $0x10] sm:$0xff]   ;;  %v961_v29 = vld [vmem:[%s1433_s9 + $0x28] sm:$0xff]  }
 0x164   :  { %v273_v32 = vmax.f32 %v267_v28, 0.0  ;;  %v271_v33 = vpop.f32.mrb[3].mxu0  ;;  %875 = vmatprep.subr.bf16.mxu0 %v1127_v14  ;;  %v960_v28 = vld [vmem:[%s1433_s9 + $0x20] sm:$0xff]   ;;  %v963_v31 = vld [vmem:[%s1433_s9 + $0x38] sm:$0xff]  }
 0x165   :  { %v274_v34 = vmax.f32 %v269_v30, 0.0  ;;  %v962_v30 = vld [vmem:[%s1433_s9 + $0x30] sm:$0xff]  }
 0x166   :  { %v280_v36 = vmul.f32 %v273_v32, %v273_v32 }
 0x167   :  { %v275_v35 = vadd.f32 %v274_v34, %v273_v32  ;;  %v281_v37 = vmul.f32 %v274_v34, %v274_v34  ;;  %876 = vmatpush3.bf16.msra.mxu0 %v958_v26  ;;  %v1130_v26 = vmov 1.0  }
 0x168   :  { %877 = vmatprep.subr.bf16.mxu0 %v1127_v14 }
 0x169   :  { %276 = vadd.xlane.f32.xlu0 %v275_v35  ;;  %v282_v38 = vadd.f32 %v281_v37, %v280_v36 }
 0x16b   :  { %878 = vmatpush3.bf16.msra.mxu0 %v959_v27 }
 0x16c   :  { %879 = vmatprep.subr.bf16.mxu0 %v1127_v14 }
 0x16d   :  { %283 = vadd.xlane.f32.xlu0 %v282_v38 }
 0x16f   :  { %880 = vmatpush3.bf16.msra.mxu0 %v960_v28 }
 0x170   :  { %881 = vmatprep.subr.bf16.mxu0 %v1127_v14 }
 0x173   :  { %882 = vmatpush3.bf16.msra.mxu0 %v961_v29 }
 0x174   :  { %883 = vmatprep.subr.bf16.mxu0 %v1127_v14 }
 0x177   :  { %884 = vmatpush3.bf16.msra.mxu0 %v962_v30 }
 0x178   :  { %885 = vmatprep.subr.bf16.mxu0 %v1127_v14 }
 0x17b   :  { %886 = vmatpush3.bf16.msra.mxu0 %v963_v31 }
 0x1f6   :  { %v277_v53 = vpop.xlane.xlu0 %276 }
 0x1f7   :  { %v279_v54 = vmul.f32 0.00390625, %v277_v53 }
 0x1f9   :  { %v286_v56 = vmul.f32 %v279_v54, %v279_v54  ;;  %v288_v62 = vsub.f32 %v273_v32, %v279_v54  ;;  %v289_v63 = vsub.f32 %v274_v34, %v279_v54 }
 0x1fa   :  { %v284_v55 = vpop.xlane.xlu0 %283 }
 0x1fb   :  { %v285_v57 = vmul.f32 0.00390625, %v284_v55 }
 0x1fd   :  { %v287_v58 = vsub.f32 %v285_v57, %v286_v56  ;;  %v964_v57 = vld [vmem:[%s1437_s13] sm:$0xff]  }
 0x1ff   :  { %v290_v59 = vadd.f32 1e-05, %v287_v58  ;;  %v965_v58 = vld [vmem:[%s1437_s13 + $0x8] sm:$0xff]  }
 0x201   :  { %968 = vrsqrt.f32 %v290_v59  ;;  %v966_v59 = vld [vmem:[%s1437_s13 + $0x10] sm:$0xff]  }
 0x20b   :  { %v969_v2 = vpop.eup %968 }
 0x20c   :  { %v293_v3 = vmul.f32 %v969_v2, %v289_v63  ;;  %v292_v6 = vmul.f32 %v969_v2, %v288_v62 }
 0x20e   :  { %v307_v7 = vmul.f32 %v303_v1, %v293_v3  ;;  %v306_v8 = vmul.f32 %v299_v0, %v292_v6  ;;  %v826_v6 = vld [vmem:[%s1435_s11] ss:$0 sm:$0xff] }
 0x210   :  { %v321_v9 = vadd.f32 %v317_v5, %v307_v7  ;;  %v320_v10 = vadd.f32 %v313_v4, %v306_v8  ;;  %v827_v8 = vld [vmem:[%s1436_s12] ss:$0 sm:$0xff] }
 0x212   :  { %v323_v11 = vpack.c.bf16 %v321_v9, %v321_v9  ;;  %v322_v12 = vpack.c.bf16 %v320_v10, %v320_v10 }
 0x214   :  { %491 = vmatprep.mubr.bf16.mxu1 %v323_v11 }
 0x215   :  { %492 = vmatmul.mubr.bf16.vlgmr.msra.gmra.mrb[0].mxu1 %v322_v12  ;;  %v828_v12 = vld [vmem:[%s1438_s14] ss:$0 sm:$0xff] }
 0x216   :  { %899 = vmatprep.mubr.msk.bf16.mxu1 %vm1128_vm0, %v1127_v14  ;;  %892 = vmatpush3.bf16.msra.mxu1 %v964_v57 }
 0x217   :  { %893 = vmatprep.subr.bf16.mxu1 %v1127_v14 }
 0x21a   :  { %894 = vmatpush3.bf16.msra.mxu1 %v965_v58 }
 0x21b   :  { %895 = vmatprep.subr.bf16.mxu1 %v1127_v14 }
 0x21e   :  { %896 = vmatpush3.bf16.msra.mxu1 %v966_v59 }
 0x21f   :  { %897 = vmatprep.subr.bf16.mxu1 %v1127_v14 }
 0x222   :  { %898 = vmatpush3.bf16.msra.mxu1 %v967_v60 }
 0x2e8   :  { %v851_v15 = vpop.f32.mrb[0].mxu1 }
 0x2e9   :  { %v852_v17 = vpop.f32.mrb[1].mxu1 }
 0x2ea   :  { %v853_v18 = vadd.f32 %v852_v17, %v851_v15  ;;  %v854_v19 = vpop.f32.mrb[2].mxu1 }
 0x2eb   :  { %v855_v21 = vpop.f32.mrb[3].mxu1 }
 0x2ec   :  { %v494_v22 = vadd.f32 %v853_v18, %v798_v16 }
 0x2ee   :  { %v499_v23 = vmax.f32 %v494_v22, 0.0  ;;  %v766_v22 = vand.u32 127, %v142_v20 }
 0x2f0   :  { %500 = vadd.xlane.f32.xlu1 %v499_v23  ;;  %v504_v24 = vmul.f32 %v499_v23, %v499_v23  ;;  %vm767_vm2 = vcmp.eq.s32.totalorder %v766_v22, 0 }
 0x2f1   :  { %v769_v27 = vsel %vm767_vm2, 0.5, %v1130_v26 }
 0x2f4   :  { %505 = vadd.xlane.f32.xlu1 %v504_v24 }
 0x37d   :  { %v501_v32 = vpop.xlane.xlu1 %500 }
 0x37e   :  { %v503_v33 = vmul.f32 0.0078125, %v501_v32 }
 0x380   :  { %v508_v35 = vmul.f32 %v503_v33, %v503_v33  ;;  %v510_v39 = vsub.f32 %v499_v23, %v503_v33  ;;  %v1129_v23 = vmov 4.0  }
 0x381   :  { %v506_v34 = vpop.xlane.xlu1 %505  ;;  %v768_v24 = vsel %vm767_vm2, 2.5, %v1129_v23 }
 0x382   :  { %v507_v36 = vmul.f32 0.0078125, %v506_v34 }
 0x384   :  { %v509_v37 = vsub.f32 %v507_v36, %v508_v35 }
 0x386   :  { %v511_v38 = vadd.f32 1e-05, %v509_v37 }
 0x388   :  { %970 = vrsqrt.f32 %v511_v38 }
 0x392   :  { %v971_v40 = vpop.eup %970 }
 0x393   :  { %v513_v42 = vmul.f32 %v971_v40, %v510_v39 }
 0x395   :  { %v521_v44 = vmul.f32 %v815_v41, %v513_v42 }
 0x397   :  { %v529_v45 = vadd.f32 %v816_v43, %v521_v44 }
 0x399   :  { %v530_v46 = vpack.c.bf16 %v529_v45, %v529_v45 }
 0x39b   :  { %888 = vmatmul.mubr.bf16.vlgmr.msra.gmra.mrb[4].mxu0 %v530_v46 }
 0x46e   :  { %v636_v48 = vpop.f32.mrb[4].mxu0 }
 0x46f   :  { %v637_v49 = vadd.f32 %v817_v47, %v636_v48  ;;  %v889_v50 = vpop.f32.mrb[5].mxu0 }
 0x470   :  { %v639_v51 = vpop.f32.mrb[6].mxu0 }
 0x471   :  { %v642_v52 = vmax.f32 %v637_v49, 0.0  ;;  %v890_v53 = vpop.f32.mrb[7].mxu0 }
 0x473   :  { %v644_v54 = vsel %vm643_vm1, %v642_v52, 0.0  ;;  %v649_v55 = vmul.f32 %v642_v52, %v642_v52 }
 0x474   :  { %645 = vadd.xlane.f32.xlu0 %v644_v54 }
 0x475   :  { %v650_v56 = vsel %vm643_vm1, %v649_v55, 0.0 }
 0x476   :  { %651 = vadd.xlane.f32.xlu1 %v650_v56 }
 0x501   :  { %v646_v61 = vpop.xlane.xlu0 %645 }
 0x502   :  { %v648_v62 = vmul.f32 0.015625, %v646_v61 }
 0x503   :  { %v652_v63 = vpop.xlane.xlu1 %651 }
 0x504   :  { %v654_v0 = vmul.f32 %v648_v62, %v648_v62  ;;  %v653_v1 = vmul.f32 0.015625, %v652_v63  ;;  %v656_v4 = vsub.f32 %v642_v52, %v648_v62 }
 0x506   :  { %v655_v2 = vsub.f32 %v653_v1, %v654_v0 }
 0x508   :  { %v657_v3 = vadd.f32 1e-05, %v655_v2 }
 0x50a   :  { %972 = vrsqrt.f32 %v657_v3 }
 0x514   :  { %v973_v5 = vpop.eup %972 }
 0x515   :  { %v659_v7 = vmul.f32 %v973_v5, %v656_v4 }
 0x517   :  { %v667_v9 = vmul.f32 %v826_v6, %v659_v7 }
 0x519   :  { %v675_v10 = vadd.f32 %v827_v8, %v667_v9 }
 0x51b   :  { %v676_v11 = vpack.c.bf16 %v675_v10, %v675_v10 }
 0x51d   :  { %900 = vmatmul.mubr.msk.bf16.vlgmr.msra.gmra.mrb[4].mxu1 %vm643_vm1, %v676_v11 }
 0x5f0   :  { %v753_v13 = vpop.f32.mrb[4].mxu1 }
 0x5f1   :  { %v754_v14 = vadd.f32 %v828_v12, %v753_v13  ;;  %v901_v15 = vpop.f32.mrb[5].mxu1 }
 0x5f2   :  { %v756_v16 = vpop.f32.mrb[6].mxu1 }
 0x5f3   :  { %v834_v17 = vmul.f32 -1.442695, %v754_v14  ;;  %v902_v18 = vpop.f32.mrb[7].mxu1 }
 0x5f5   :  { %974 = vpow2.f32 %v834_v17 }
 0x5ff   :  { %v975_v19 = vpop.eup %974 }
 0x600   :  { %v762_v21 = vadd.f32 1.0, %v975_v19 }
 0x602   :  { %976 = vrcp.f32 %v762_v21 }
 0x60c   :  { %v977_v25 = vpop.eup %976 }
 0x60d   :  { %v770_v28 = vmul.f32 %v977_v25, %v768_v24 }
 0x60f   :  { %v771_v29 = vadd.f32 %v770_v28, %v769_v27 }
 0x611   :  { %773 = vst.msk [vmem:[%s1439_s15] sm:$0xff] %vm772_vm3, %v771_v29 }
 0x612   :  { %778 = vsyncpa [#allocation3], 1 }
 0x613   :  { %779 = vsyncpa [#allocation5], 1 }
 0x614   :  { %780 = vsyncpa [#allocation8], 1 }
 0x615   :  { %781 = vsyncpa [#allocation11], 1 }

</bundles_post_ra>
